<compile_context>
chip_gen: v7x
topology: tpu7x:2x2x1
jax: 0.10.0
libtpu: 0.0.40
codegen_flags: <defaults>
</compile_context>

<pallas_src>
import jax
import jax.numpy as jnp
from jax.experimental import pallas as pl
from jax.experimental.pallas import tpu as pltpu

_LANE = 128
_SUBLANE = 8


def _round_up(x, m):
    return ((x + m - 1) // m) * m


def _msfe_kernel(pp_ref, tp_ref, pn_ref, tn_ref, part_ref, acc_ref):
    """Accumulate squared-error partial sums for the two (pred, target) pairs.

    Grid: (num_cores [parallel], inner_tiles [arbitrary/sequential]).
    acc_ref: (2, 8, 128) f32 VMEM scratch — vreg-shaped running partial sums
             ([0] -> positive pair, [1] -> negative pair), persisting across
             the inner (reduction) grid axis.
    part_ref: (1, 2, 8, 128) output block — this core's partial sums, written
              once on the last inner step.
    """
    i = pl.program_id(1)

    @pl.when(i == 0)
    def _():
        acc_ref[...] = jnp.zeros_like(acc_ref)

    dp = pp_ref[...].astype(jnp.float32) - tp_ref[...].astype(jnp.float32)
    dn = pn_ref[...].astype(jnp.float32) - tn_ref[...].astype(jnp.float32)

    # Reduce only along the tile-rows axis (vreg-wise adds on the VPU); the
    # single cross-lane/sublane reduction happens in JAX after the kernel.
    acc_ref[0] += jnp.sum((dp * dp).reshape(-1, _SUBLANE, _LANE), axis=0)
    acc_ref[1] += jnp.sum((dn * dn).reshape(-1, _SUBLANE, _LANE), axis=0)

    @pl.when(i == pl.num_programs(1) - 1)
    def _():
        part_ref[...] = acc_ref[...].reshape(part_ref.shape)


def msfe_loss(pred_pos, target_pos, pred_neg, target_neg, *,
              tile_rows=1024, num_cores=2):
    """MSFELoss forward: (mse(pp, tp))**2 + (mse(pn, tn))**2 -> scalar."""
    assert pred_pos.shape == target_pos.shape
    assert pred_neg.shape == target_neg.shape
    assert pred_pos.shape == pred_neg.shape, "pairs assumed same shape here"

    n_elems = pred_pos.size

    # Tile / grid geometry: pad rows so every core gets an equal number of
    # full tiles (zero padding contributes 0 to the squared-error sums).
    rows = pl.cdiv(n_elems, _LANE)
    per_core_rows = _round_up(pl.cdiv(rows, num_cores), _SUBLANE)
    tile_rows = max(_SUBLANE, min(_round_up(tile_rows, _SUBLANE), per_core_rows))
    inner_tiles = pl.cdiv(per_core_rows, tile_rows)
    rows_padded = num_cores * inner_tiles * tile_rows
    n_padded = rows_padded * _LANE

    def to_slab(x):
        flat = x.reshape(-1)
        if n_padded != n_elems:
            flat = jnp.pad(flat, (0, n_padded - n_elems))
        return flat.reshape(rows_padded, _LANE)

    pp, tp, pn, tn = map(to_slab, (pred_pos, target_pos, pred_neg, target_neg))

    in_spec = pl.BlockSpec((tile_rows, _LANE),
                           lambda c, i: (c * inner_tiles + i, 0))
    out_spec = pl.BlockSpec((1, 2, _SUBLANE, _LANE), lambda c, i: (c, 0, 0, 0))

    in_bytes = jnp.dtype(pred_pos.dtype).itemsize
    cost = pl.CostEstimate(
        flops=6 * n_elems,           # sub + mul + add per element, 2 pairs
        transcendentals=0,
        bytes_accessed=4 * n_padded * in_bytes
                       + num_cores * 2 * _SUBLANE * _LANE * 4,
    )

    partials = pl.pallas_call(
        _msfe_kernel,
        out_shape=jax.ShapeDtypeStruct((num_cores, 2, _SUBLANE, _LANE),
                                       jnp.float32),
        grid_spec=pltpu.PrefetchScalarGridSpec(
            num_scalar_prefetch=0,
            grid=(num_cores, inner_tiles),
            in_specs=[in_spec, in_spec, in_spec, in_spec],
            out_specs=out_spec,
            scratch_shapes=[pltpu.VMEM((2, _SUBLANE, _LANE), jnp.float32)],
        ),
        compiler_params=pltpu.CompilerParams(
            dimension_semantics=("parallel", "arbitrary"),
        ),
        cost_estimate=cost,
    )(pp, tp, pn, tn)

    # Tiny epilogue in plain JAX: combine per-core vreg partials, form means,
    # then FNE**2 + FPE**2.
    sums = jnp.sum(partials, axis=(0, 2, 3))            # (2,) = [pos, neg]
    fne = sums[0] / jnp.float32(n_elems)                 # mse(pred_pos, target_pos)
    fpe = sums[1] / jnp.float32(n_elems)                 # mse(pred_neg, target_neg)
    return fne * fne + fpe * fpe


def msfe_loss_ref(pred_pos, target_pos, pred_neg, target_neg):
    fne = jnp.mean((pred_pos - target_pos) ** 2)
    fpe = jnp.mean((pred_neg - target_neg) ** 2)
    return fne ** 2 + fpe ** 2


if __name__ == "__main__":
    key = jax.random.PRNGKey(0)
    k1, k2, k3, k4 = jax.random.split(key, 4)

    # NCHW inputs, small shapes.
    shape = (2, 4, 16, 16)
    pred_pos = jax.random.normal(k1, shape, dtype=jnp.float32)
    target_pos = jax.random.normal(k2, shape, dtype=jnp.float32)
    pred_neg = jax.random.normal(k3, shape, dtype=jnp.float32)
    target_neg = jax.random.normal(k4, shape, dtype=jnp.float32)

    out = msfe_loss(pred_pos, target_pos, pred_neg, target_neg)
    out = jax.block_until_ready(out)

    ref = msfe_loss_ref(pred_pos, target_pos, pred_neg, target_neg)
    assert jnp.allclose(out, ref, rtol=1e-5, atol=1e-6), (out, ref)

    print("KERNEL_OK")
</pallas_src>

<mosaic_0001>
module attributes {stable_mosaic.version = 11 : i64} {
  func.func @_msfe_kernel(%arg0: i32, %arg1: i32, %arg2: memref<8x128xf32, #tpu.memory_space<vmem>>, %arg3: memref<8x128xf32, #tpu.memory_space<vmem>>, %arg4: memref<8x128xf32, #tpu.memory_space<vmem>>, %arg5: memref<8x128xf32, #tpu.memory_space<vmem>>, %arg6: memref<1x2x8x128xf32, #tpu.memory_space<vmem>>, %arg7: memref<2x8x128xf32, #tpu.memory_space<vmem>>) attributes {dimension_semantics = [#tpu.dimension_semantics<parallel>, #tpu.dimension_semantics<arbitrary>], iteration_bounds = array<i64: 2, 1>, scalar_prefetch = 0 : i64, scratch_operands = 1 : i64, tpu.core_type = #tpu.core_type<tc>, window_params = [{transform_indices = @transform_0, window_bounds = array<i64: 8, 128>}, {transform_indices = @transform_1, window_bounds = array<i64: 8, 128>}, {transform_indices = @transform_2, window_bounds = array<i64: 8, 128>}, {transform_indices = @transform_3, window_bounds = array<i64: 8, 128>}, {transform_indices = @transform_4, window_bounds = array<i64: 1, 2, 8, 128>}]} {
    %c0_i32 = arith.constant 0 : i32
    %0 = arith.cmpi eq, %arg1, %c0_i32 : i32
    %1 = arith.extui %0 : i1 to i32
    %c0_i32_0 = arith.constant 0 : i32
    %2 = arith.cmpi ne, %1, %c0_i32_0 : i32
    scf.if %2 {
      %cst_22 = arith.constant 0.000000e+00 : f32
      %30 = vector.broadcast %cst_22 : f32 to vector<2x8x128xf32>
      %c0_23 = arith.constant 0 : index
      %c0_24 = arith.constant 0 : index
      %c0_25 = arith.constant 0 : index
      %31 = vector.load %arg7[%c0_23, %c0_24, %c0_25] : memref<2x8x128xf32, #tpu.memory_space<vmem>>, vector<2x8x128xf32>
      tpu.vector_store %arg7[%c0_23, %c0_24, %c0_25], %30 {strides = array<i32>} : memref<2x8x128xf32, #tpu.memory_space<vmem>>, vector<2x8x128xf32>,
    } else {
    }
    %c0 = arith.constant 0 : index
    %c0_1 = arith.constant 0 : index
    %3 = vector.load %arg2[%c0, %c0_1] : memref<8x128xf32, #tpu.memory_space<vmem>>, vector<8x128xf32>
    %c0_2 = arith.constant 0 : index
    %c0_3 = arith.constant 0 : index
    %4 = vector.load %arg3[%c0_2, %c0_3] : memref<8x128xf32, #tpu.memory_space<vmem>>, vector<8x128xf32>
    %5 = arith.subf %3, %4 : vector<8x128xf32>
    %c0_4 = arith.constant 0 : index
    %c0_5 = arith.constant 0 : index
    %6 = vector.load %arg4[%c0_4, %c0_5] : memref<8x128xf32, #tpu.memory_space<vmem>>, vector<8x128xf32>
    %c0_6 = arith.constant 0 : index
    %c0_7 = arith.constant 0 : index
    %7 = vector.load %arg5[%c0_6, %c0_7] : memref<8x128xf32, #tpu.memory_space<vmem>>, vector<8x128xf32>
    %8 = arith.subf %6, %7 : vector<8x128xf32>
    %c0_8 = arith.constant 0 : index
    %c0_9 = arith.constant 0 : index
    %c0_10 = arith.constant 0 : index
    %9 = vector.load %arg7[%c0_8, %c0_9, %c0_10] : memref<2x8x128xf32, #tpu.memory_space<vmem>>, vector<1x8x128xf32>
    %10 = vector.shape_cast %9 : vector<1x8x128xf32> to vector<8x128xf32>
    %11 = arith.mulf %5, %5 : vector<8x128xf32>
    %12 = vector.shape_cast %11 : vector<8x128xf32> to vector<1x8x128xf32>
    %cst = arith.constant dense<0.000000e+00> : vector<8x128xf32>
    %13 = vector.multi_reduction <add>, %12, %cst [0] : vector<1x8x128xf32> to vector<8x128xf32>
    %14 = arith.addf %10, %13 : vector<8x128xf32>
    %c0_11 = arith.constant 0 : index
    %c0_12 = arith.constant 0 : index
    %c0_13 = arith.constant 0 : index
    %15 = vector.load %arg7[%c0_11, %c0_12, %c0_13] : memref<2x8x128xf32, #tpu.memory_space<vmem>>, vector<1x8x128xf32>
    %16 = vector.shape_cast %15 : vector<1x8x128xf32> to vector<8x128xf32>
    %17 = vector.shape_cast %14 : vector<8x128xf32> to vector<1x8x128xf32>
    tpu.vector_store %arg7[%c0_11, %c0_12, %c0_13], %17 {strides = array<i32>} : memref<2x8x128xf32, #tpu.memory_space<vmem>>, vector<1x8x128xf32>,
    %c1 = arith.constant 1 : index
    %c0_14 = arith.constant 0 : index
    %c0_15 = arith.constant 0 : index
    %18 = vector.load %arg7[%c1, %c0_14, %c0_15] : memref<2x8x128xf32, #tpu.memory_space<vmem>>, vector<1x8x128xf32>
    %19 = vector.shape_cast %18 : vector<1x8x128xf32> to vector<8x128xf32>
    %20 = arith.mulf %8, %8 : vector<8x128xf32>
    %21 = vector.shape_cast %20 : vector<8x128xf32> to vector<1x8x128xf32>
    %cst_16 = arith.constant dense<0.000000e+00> : vector<8x128xf32>
    %22 = vector.multi_reduction <add>, %21, %cst_16 [0] : vector<1x8x128xf32> to vector<8x128xf32>
    %23 = arith.addf %19, %22 : vector<8x128xf32>
    %c1_17 = arith.constant 1 : index
    %c0_18 = arith.constant 0 : index
    %c0_19 = arith.constant 0 : index
    %24 = vector.load %arg7[%c1_17, %c0_18, %c0_19] : memref<2x8x128xf32, #tpu.memory_space<vmem>>, vector<1x8x128xf32>
    %25 = vector.shape_cast %24 : vector<1x8x128xf32> to vector<8x128xf32>
    %26 = vector.shape_cast %23 : vector<8x128xf32> to vector<1x8x128xf32>
    tpu.vector_store %arg7[%c1_17, %c0_18, %c0_19], %26 {strides = array<i32>} : memref<2x8x128xf32, #tpu.memory_space<vmem>>, vector<1x8x128xf32>,
    %c0_i32_20 = arith.constant 0 : i32
    %27 = arith.cmpi eq, %arg1, %c0_i32_20 : i32
    %28 = arith.extui %27 : i1 to i32
    %c0_i32_21 = arith.constant 0 : i32
    %29 = arith.cmpi ne, %28, %c0_i32_21 : i32
    scf.if %29 {
      %c0_22 = arith.constant 0 : index
      %c0_23 = arith.constant 0 : index
      %c0_24 = arith.constant 0 : index
      %30 = vector.load %arg7[%c0_22, %c0_23, %c0_24] : memref<2x8x128xf32, #tpu.memory_space<vmem>>, vector<2x8x128xf32>
      %31 = vector.shape_cast %30 : vector<2x8x128xf32> to vector<1x2x8x128xf32>
      %c0_25 = arith.constant 0 : index
      %c0_26 = arith.constant 0 : index
      %c0_27 = arith.constant 0 : index
      %c0_28 = arith.constant 0 : index
      %32 = vector.load %arg6[%c0_25, %c0_26, %c0_27, %c0_28] : memref<1x2x8x128xf32, #tpu.memory_space<vmem>>, vector<1x2x8x128xf32>
      tpu.vector_store %arg6[%c0_25, %c0_26, %c0_27, %c0_28], %31 {strides = array<i32>} : memref<1x2x8x128xf32, #tpu.memory_space<vmem>>, vector<1x2x8x128xf32>,
    } else {
    }
    return
  }
  func.func @transform_0(%arg0: i32, %arg1: i32) -> (i32, i32) {
    %c1_i32 = arith.constant 1 : i32
    %0 = arith.muli %arg0, %c1_i32 : i32
    %1 = arith.addi %0, %arg1 : i32
    %c0_i32 = arith.constant 0 : i32
    %c0_i32_0 = arith.constant 0 : i32
    return %1, %c0_i32 : i32, i32
  }
  func.func @transform_1(%arg0: i32, %arg1: i32) -> (i32, i32) {
    %c1_i32 = arith.constant 1 : i32
    %0 = arith.muli %arg0, %c1_i32 : i32
    %1 = arith.addi %0, %arg1 : i32
    %c0_i32 = arith.constant 0 : i32
    %c0_i32_0 = arith.constant 0 : i32
    return %1, %c0_i32 : i32, i32
  }
  func.func @transform_2(%arg0: i32, %arg1: i32) -> (i32, i32) {
    %c1_i32 = arith.constant 1 : i32
    %0 = arith.muli %arg0, %c1_i32 : i32
    %1 = arith.addi %0, %arg1 : i32
    %c0_i32 = arith.constant 0 : i32
    %c0_i32_0 = arith.constant 0 : i32
    return %1, %c0_i32 : i32, i32
  }
  func.func @transform_3(%arg0: i32, %arg1: i32) -> (i32, i32) {
    %c1_i32 = arith.constant 1 : i32
    %0 = arith.muli %arg0, %c1_i32 : i32
    %1 = arith.addi %0, %arg1 : i32
    %c0_i32 = arith.constant 0 : i32
    %c0_i32_0 = arith.constant 0 : i32
    return %1, %c0_i32 : i32, i32
  }
  func.func @transform_4(%arg0: i32, %arg1: i32) -> (i32, i32, i32, i32) {
    %c0_i32 = arith.constant 0 : i32
    %c0_i32_0 = arith.constant 0 : i32
    %c0_i32_1 = arith.constant 0 : i32
    %c0_i32_2 = arith.constant 0 : i32
    return %arg0, %c0_i32, %c0_i32_0, %c0_i32_1 : i32, i32, i32, i32
  }
}

</mosaic_0001>

<bundles_post_ra>
// kernel: tpu_custom_call.1
= control target key start
LH: loop header
LB: loop body
LE: loop exit
PB: predicated region body
PF: predicated region fallthrough
CT: control target
= control target key end

     0   :  { %s1182_s0 = inlined_call_operand.hbm [shape: f32[16,128], index: 0, kind: input, shape index: {}]   ;;  %s1183_s1 = inlined_call_operand.hbm [shape: f32[16,128], index: 1, kind: input, shape index: {}]   ;;  %s1184_s2 = inlined_call_operand.hbm [shape: f32[16,128], index: 2, kind: input, shape index: {}]   ;;  %s1185_s3 = inlined_call_operand.hbm [shape: f32[16,128], index: 3, kind: input, shape index: {}]   ;;  %s1186_s4 = inlined_call_operand.hbm [shape: f32[2,2,8,128], index: 4, kind: output, shape index: {}]  }
   0x1   :  { %1196 = sst [smem:[#allocation21_spill]] %s1183_s1 }
   0x2   :  { %9 = vsyncpa [#allocation4], 0 }
   0x3   :  { %11 = vsyncpa [#allocation4 + $0x1], 0 }
   0x4   :  { %12 = vsyncpa [#allocation7], 0 }
   0x5   :  { %14 = vsyncpa [#allocation7 + $0x1], 0 }
   0x6   :  { %15 = vsyncpa [#allocation10], 0 }
   0x7   :  { %17 = vsyncpa [#allocation10 + $0x1], 0 }
   0x8   :  { %18 = vsyncpa [#allocation5], 0 }
   0x9   :  { %20 = vsyncpa [#allocation5 + $0x1], 0  ;;  %s891_s15 = smov 0   ;;  %s893_s16 = smov 0  }
   0xa   :  { %s895_s17 = smov 0   ;;  %s897_s18 = smov 0  }
   0xb   :  { %s899_s19 = smov 0   ;;  %s901_s20 = smov 0  }
   0xc LB: > { %1197 = sst [smem:[#allocation16_spill]] %s845_s17  ;;  %s922_s21 = sadd.s32 4294967295, %s857_s20   ;;  %s857_s20 = sphi %s901_s20, %s26_s20   ;;  %s853_s19 = sphi %s899_s19, %s1223_s19   ;;  %s849_s18 = sphi %s897_s18, %s1222_s18   ;;  %s845_s17 = sphi %s895_s17, %s1221_s17   ;;  %s841_s16 = sphi %s893_s16, %s1225_s16   ;;  %s837_s15 = sphi %s891_s15, %s1224_s15  }
   0xd   : > { %1198 = sst [smem:[#allocation17_spill]] %s853_s19  ;;  %s545_s22 = sadd.s32 4294967294, %s857_s20  }
   0xe   : > { %1199 = sst [smem:[#allocation18_spill]] %s857_s20  ;;  %s38_s23 = sadd.s32 1, %s853_s19 }
   0xf   : > { %s47_s24 = sadd.s32 1, %s845_s17  ;;  %p40_p0 = scmp.ge.s32.totalorder %s38_s23, 2 }
  0x10   : > { %p54_p1 = scmp.ne.s32.totalorder %s845_s17, %s841_s16  ;;  %p55_p2 = scmp.eq.s32.totalorder %s857_s20, 0 }
  0x11   : > { %p60_p3 = scmp.ne.s32.totalorder %s841_s16, %s837_s15  ;;  %s1227_s23 = smov (%p40_p0, %s38_s23), 0 }
  0x12   : > { %1200 = sst [smem:[#allocation19_spill]] %s1227_s23  ;;  %p934_p4 = por %p55_p2, %p54_p1 }
  0x13   : > { %p61_p5 = scmp.eq.s32.totalorder %s922_s21, 0  ;;  %s44_s26 = ssub.s32 %s853_s19, %s1227_s23 }
  0x14   : > { %p168_p6 = scmp.eq.s32.totalorder %s922_s21, 1  ;;  %p45_p7 = scmp.eq.s32.totalorder %s44_s26, 0 }
  0x15   : > { %p942_p8 = por %p61_p5, %p60_p3  ;;  %p174_p10 = scmp.eq.s32.totalorder %s545_s22, 1 }
  0x16   : > { %p946_p9 = por %p168_p6, %p54_p1  ;;  %p595_p13 = scmp.lt.s32.totalorder %s857_s20, 2 }
  0x17   : > { %s1202_s27 = scalar_select %p942_p8, 1, 0 }
  0x18   : > { %s1203_s28 = scalar_select %p946_p9, 1, 0 }
  0x19   : > { %s951_s29 = scalar_select %p45_p7, %s845_s17, %s47_s24  }
  0x1a   : > { %p953_p11 = por %p174_p10, %p60_p3  ;;  %s960_s5 = sand.u32 1, %s845_s17  }
  0x1b   : > { %1204 = sst [smem:[#allocation20_spill]] %s951_s29  ;;  %s963_s6 = sshll.u32 %s960_s5, 3 }
  0x1c   : > { %s1205_s30 = scalar_select %p953_p11, 1, 0 }
  0x1d   : > { %s966_s7 = sshll.u32 %s853_s19, 7  ;;  %p970_p0 = pnand %p595_p13, %p934_p4 }
  0x1e   : > { %s213_s9 = sand.u32 1, %s857_s20   ;;  %s1207_s1 = sld [smem:[#allocation21_spill]] }
  0x1f   : > { %s1206_s8 = scalar_select %p970_p0, 1, 0 }
  0x20   : > { %s217_s13 = scalar_lea.vmem [#allocation6], %s963_s6  ;;  %s986_s22 = scalar_lea.sflag [#allocation7], %s213_s9 }
  0x21   : > { %s225_s14 = sshll.u32 %s217_s13, 4  ;;  %p992_p4 = pneg %p970_p0  ;;  %s983_s14 = int_to_ptr.vmem [resolvable:$true] %s225_s14 }
  0x24   : > { %s979_s12 = scalar_lea.hbm %s1207_s1, %s966_s7  ;;  %s652_s11 = scalar_lea.hbm %s1207_s1, 256 }
  0x25   : > { %s647_s24 = scalar_lea.hbm %s979_s12, 128  ;;  %p653_p7 = scmp.lt.u32.totalorder %s979_s12, %s1207_s1 }
  0x26   : > { %p648_p3 = scmp.ne.s32.totalorder %s979_s12, %s647_s24  ;;  %p654_p10 = scmp.lt.u32.totalorder %s652_s11, %s647_s24 }
  0x27   : > { %p656_p12 = scmp.lt.u32.totalorder %s647_s24, %s979_s12 }
  0x28   : > { %p650_p5 = pnand %p992_p4, %p648_p3  ;;  %p655_p13 = por %p654_p10, %p653_p7 }
  0x2a   : > { %p651_p6 = pneg %p650_p5  ;;  %p657_p1 = por %p656_p12, %p655_p13 }
  0x2c   : > { %p658_p2 = pnand %p657_p1, %p651_p6 }
  0x2e   : > { %661 = shalt.err (!%p658_p2)
}
  0x2f   : > { %s662_s9 = scalar_lea.vmem %s983_s14, 128  ;;  %s859_s26 = smov [#allocation6]  }
  0x30   : > { %p663_p3 = scmp.ne.s32.totalorder %s983_s14, %s662_s9  ;;  %s667_s10 = sshll.u32 %s859_s26, 4  ;;  %s668_s10 = int_to_ptr.vmem [resolvable:$false] %s667_s10 }
  0x31   : > { %s669_s23 = scalar_lea.vmem %s668_s10, 256  ;;  %p670_p9 = scmp.lt.s32.totalorder %s983_s14, %s668_s10 }
  0x32   : > { %p665_p5 = pnand %p663_p3, %p992_p4  ;;  %p671_p8 = scmp.lt.s32.totalorder %s669_s23, %s662_s9 }
  0x34   : > { %p666_p11 = pneg %p665_p5  ;;  %p672_p7 = por %p671_p8, %p670_p9 }
  0x36   : > { %p673_p10 = pnand %p672_p7, %p666_p11 }
  0x38   : > { %676 = shalt.err (!%p673_p10)
}
  0x39   : > { %584 = dma.hbm_to_vmem [thread:$0]  (!%p970_p0), %s979_s12, 128, %s983_s14, %s986_s22  }
  0x3a   : > { %p1209_p12 = scmp.lt.s32.totalorder %s857_s20, 3  ;;  %p1210_p1 = scmp.ge.s32.totalorder %s857_s20, 1 }
  0x3b   : > { %s1028_s9 = scalar_lea.hbm %s1182_s0, %s966_s7  ;;  %s198_s26 = scalar_lea.vmem [#allocation3], %s963_s6 }
  0x3c   : > { %p1020_p2 = pnand %p1210_p1, %p1209_p12  ;;  %s206_s10 = sshll.u32 %s198_s26, 4  ;;  %s1031_s10 = int_to_ptr.vmem [resolvable:$true] %s206_s10 }
  0x3d   : > { %s1037_s23 = scalar_lea.hbm %s1184_s2, %s966_s7  ;;  %s195_s1 = scalar_lea.sflag [#allocation4], %s960_s5 }
  0x3e   : > { %s1211_s24 = scalar_select %p1020_p2, 1, 0 }
  0x3f   : > { %s677_s19 = scalar_lea.hbm %s1028_s9, 128  ;;  %s682_s29 = scalar_lea.hbm %s1182_s0, 256 }
  0x40   : > { %p678_p8 = scmp.ne.s32.totalorder %s1028_s9, %s677_s19  ;;  %p683_p6 = scmp.lt.u32.totalorder %s1028_s9, %s1182_s0 }
  0x41   : > { %p684_p13 = scmp.lt.u32.totalorder %s682_s29, %s677_s19  ;;  %p686_p5 = scmp.lt.u32.totalorder %s677_s19, %s1028_s9 }
  0x42   : > { %p680_p9 = pnand %p678_p8, %p992_p4 }
  0x43   : > { %p685_p3 = por %p684_p13, %p683_p6 }
  0x44   : > { %p681_p11 = pneg %p680_p9 }
  0x45   : > { %p687_p7 = por %p686_p5, %p685_p3 }
  0x47   : > { %p688_p10 = pnand %p687_p7, %p681_p11 }
  0x49   : > { %691 = shalt.err (!%p688_p10)
}
  0x4a   : > { %s692_s26 = scalar_lea.vmem %s1031_s10, 128  ;;  %s860_s12 = smov [#allocation3]  }
  0x4b   : > { %p693_p12 = scmp.ne.s32.totalorder %s1031_s10, %s692_s26  ;;  %s697_s14 = sshll.u32 %s860_s12, 4  ;;  %s698_s14 = int_to_ptr.vmem [resolvable:$false] %s697_s14 }
  0x4c   : > { %s699_s17 = scalar_lea.vmem %s698_s14, 256  ;;  %p700_p9 = scmp.lt.s32.totalorder %s1031_s10, %s698_s14 }
  0x4d   : > { %p695_p1 = pnand %p693_p12, %p992_p4  ;;  %p701_p2 = scmp.lt.s32.totalorder %s699_s17, %s692_s26 }
  0x4f   : > { %p696_p8 = pneg %p695_p1  ;;  %p702_p6 = por %p701_p2, %p700_p9 }
  0x51   : > { %p703_p13 = pnand %p702_p6, %p696_p8 }
  0x53   : > { %706 = shalt.err (!%p703_p13)
}
  0x54   : > { %581 = dma.hbm_to_vmem [thread:$0]  (!%p970_p0), %s1028_s9, 128, %s1031_s10, %s195_s1  }
  0x55   : > { %s236_s19 = scalar_lea.vmem [#allocation8], %s963_s6  ;;  %s707_s29 = scalar_lea.hbm %s1037_s23, 128 }
  0x56   : > { %s244_s20 = sshll.u32 %s236_s19, 4  ;;  %p708_p11 = scmp.ne.s32.totalorder %s1037_s23, %s707_s29  ;;  %s245_s20 = int_to_ptr.vmem [resolvable:$true] %s244_s20 }
  0x57   : > { %s712_s26 = scalar_lea.hbm %s1184_s2, 256  ;;  %p713_p5 = scmp.lt.u32.totalorder %s1037_s23, %s1184_s2 }
  0x58   : > { %p710_p2 = pnand %p708_p11, %p992_p4  ;;  %p714_p7 = scmp.lt.u32.totalorder %s712_s26, %s707_s29 }
  0x59   : > { %p716_p12 = scmp.lt.u32.totalorder %s707_s29, %s1037_s23 }
  0x5a   : > { %p711_p3 = pneg %p710_p2  ;;  %p715_p10 = por %p714_p7, %p713_p5 }
  0x5c   : > { %p717_p1 = por %p716_p12, %p715_p10 }
  0x5e   : > { %p718_p8 = pnand %p717_p1, %p711_p3 }
  0x60   : > { %721 = shalt.err (!%p718_p8)
}
  0x61   : > { %s722_s1 = scalar_lea.vmem %s245_s20, 128  ;;  %s861_s9 = smov [#allocation8]  }
  0x62   : > { %p723_p9 = scmp.ne.s32.totalorder %s245_s20, %s722_s1  ;;  %s727_s10 = sshll.u32 %s861_s9, 4  ;;  %s728_s10 = int_to_ptr.vmem [resolvable:$false] %s727_s10 }
  0x63   : > { %s729_s17 = scalar_lea.vmem %s728_s10, 256  ;;  %p730_p11 = scmp.lt.s32.totalorder %s245_s20, %s728_s10 }
  0x64   : > { %p725_p6 = pnand %p723_p9, %p992_p4  ;;  %p731_p2 = scmp.lt.s32.totalorder %s729_s17, %s722_s1 }
  0x66   : > { %p726_p13 = pneg %p725_p6  ;;  %p732_p0 = por %p731_p2, %p730_p11 }
  0x68   : > { %p733_p5 = pnand %p732_p0, %p726_p13 }
  0x6a   : > { %736 = shalt.err (!%p733_p5)
}
  0x6b   : > { %p1212_p7 = scmp.ne.s32.totalorder %s1206_s8, 0  ;;  %s1084_s11 = scalar_lea.hbm %s1185_s3, %s966_s7 }
  0x6c   : > { %s255_s13 = scalar_lea.vmem [#allocation9], %s963_s6  ;;  %s252_s12 = scalar_lea.sflag [#allocation10], %s960_s5 }
  0x6d   : > { %587 = dma.hbm_to_vmem [thread:$0]  (!%p1212_p7), %s1037_s23, 128, %s245_s20, %s986_s22  }
  0x6e   : > { %s263_s26 = sshll.u32 %s255_s13, 4  ;;  %s737_s14 = scalar_lea.hbm %s1084_s11, 128  ;;  %s264_s26 = int_to_ptr.vmem [resolvable:$true] %s263_s26 }
  0x6f   : > { %p738_p0 = scmp.ne.s32.totalorder %s1084_s11, %s737_s14  ;;  %s742_s23 = scalar_lea.hbm %s1185_s3, 256 }
  0x70   : > { %p743_p12 = scmp.lt.u32.totalorder %s1084_s11, %s1185_s3  ;;  %p744_p1 = scmp.lt.u32.totalorder %s742_s23, %s737_s14 }
  0x71   : > { %p740_p3 = pnand %p738_p0, %p992_p4  ;;  %p746_p9 = scmp.lt.u32.totalorder %s737_s14, %s1084_s11 }
  0x72   : > { %p745_p8 = por %p744_p1, %p743_p12 }
  0x73   : > { %p741_p10 = pneg %p740_p3 }
  0x74   : > { %p747_p6 = por %p746_p9, %p745_p8 }
  0x76   : > { %p748_p13 = pnand %p747_p6, %p741_p10 }
  0x78   : > { %751 = shalt.err (!%p748_p13)
}
  0x79   : > { %s752_s5 = scalar_lea.vmem %s264_s26, 128  ;;  %s862_s6 = smov [#allocation9]  }
  0x7a   : > { %p753_p11 = scmp.ne.s32.totalorder %s264_s26, %s752_s5  ;;  %s757_s9 = sshll.u32 %s862_s6, 4  ;;  %s758_s9 = int_to_ptr.vmem [resolvable:$false] %s757_s9 }
  0x7b   : > { %s759_s10 = scalar_lea.vmem %s758_s9, 256  ;;  %p760_p0 = scmp.lt.s32.totalorder %s264_s26, %s758_s9 }
  0x7c   : > { %p755_p2 = pnand %p753_p11, %p992_p4  ;;  %p761_p3 = scmp.lt.s32.totalorder %s759_s10, %s752_s5 }
  0x7e   : > { %p756_p5 = pneg %p755_p2  ;;  %p762_p7 = por %p761_p3, %p760_p0 }
  0x80   : > { %p763_p1 = pnand %p762_p7, %p756_p5 }
  0x82   : > { %766 = shalt.err (!%p763_p1)
}
  0x83   : > { %p1213_p12 = scmp.ne.s32.totalorder %s1206_s8, 0  ;;  %p1214_p10 = scmp.ne.s32.totalorder %s1211_s24, 0 }
  0x84   : > { %s1108_s25 = sand.u32 (!%p1214_p10), 1, %s841_s16   ;;  %p1215_p4 = scmp.ne.s32.totalorder (!%p1214_p10), %s1202_s27, 0 }
  0x85   : > { %590 = dma.hbm_to_vmem [thread:$0]  (!%p1213_p12), %s1084_s11, 128, %s264_s26, %s252_s12  }
  0x86   : > { %272 = sbr.rel (%p1214_p10) target bundleno = 175 (0xaf), region = 36  ;;  %s557_s17 = sshll.u32 (!%p1214_p10), %s1108_s25, 3 }
  0x87   : > { %s275_s19 = scalar_lea.sflag (!%p1214_p10), [#allocation4], %s1108_s25  ;;  %s278_s29 = scalar_lea.vmem (!%p1214_p10), [#allocation3], %s557_s17 }
  0x8d   : > { %820 = dma.done.wait (%p1215_p4), %s275_s19, 128  }
  0x8e   : > { %822 = vsyncadd (%p1215_p4), %s275_s19, 4294967168  ;;  %s283_s8 = sand.u32 1, %s922_s21   ;;  %s287_s24 = scalar_lea.vmem [#allocation6], %s557_s17 }
  0x8f   : > { %s284_s11 = scalar_lea.sflag [#allocation7], %s283_s8 }
  0x90   : > { %824 = dma.done.wait (%p1215_p4), %s284_s11, 256  }
  0x91   : > { %826 = vsyncadd (%p1215_p4), %s284_s11, 4294967040  ;;  %s296_s13 = scalar_lea.vmem [#allocation8], %s557_s17  ;;  %s302_s26 = scalar_lea.sflag [#allocation10], %s1108_s25 }
  0x92   : > { %s305_s12 = scalar_lea.vmem [#allocation9], %s557_s17 }
  0x93   : > { %828 = dma.done.wait (%p1215_p4), %s302_s26, 128  }
  0x94   : > { %830 = vsyncadd (%p1215_p4), %s302_s26, 4294967168  ;;  %s561_s21 = sshll.u32 %s1108_s25, 4  ;;  %v355_v0 = vld [vmem:[%s278_s29] sm:$0xff]  ;;  %v356_v1 = vld [vmem:[%s287_s24] sm:$0xff]  ;;  %s567_s22 = sshll.u32 %s849_s18, 8 }
  0x95   : > { %s344_s14 = scalar_lea.vmem [#allocation11], %s561_s21  ;;  %v358_v2 = vld [vmem:[%s296_s13] sm:$0xff]  ;;  %v357_v3 = vsub.f32 %v355_v0, %v356_v1  ;;  %v359_v4 = vld [vmem:[%s305_s12] sm:$0xff]  ;;  %s1133_s20 = scalar_lea.hbm %s1186_s4, %s567_s22 }
  0x96   : > { %s393_s1 = sshll.u32 %s344_s14, 4  ;;  %v360_v5 = vsub.f32 %v358_v2, %v359_v4  ;;  %s380_s7 = scalar_lea.sflag [#allocation5], %s1108_s25  ;;  %s1128_s1 = int_to_ptr.vmem [resolvable:$true] %s393_s1 }
  0x97   : > { %v362_v6 = vmul.f32 %v357_v3, %v357_v3  ;;  %s767_s5 = scalar_lea.vmem %s1128_s1, 256  ;;  %p1216_p8 = scmp.ne.s32.totalorder %s1203_s28, 0 }
  0x98   : > { %v368_v7 = vmul.f32 %v360_v5, %v360_v5  ;;  %p768_p7 = scmp.ne.s32.totalorder %s1128_s1, %s767_s5  ;;  %s863_s18 = smov [#allocation11]  }
  0x99   : > { %377 = vst [vmem:[%s344_s14] sm:$0xff] %v362_v6  ;;  %s771_s6 = sshll.u32 %s863_s18, 4  ;;  %s772_s6 = int_to_ptr.vmem [resolvable:$false] %s771_s6 }
  0x9a   : > { %378 = vst [vmem:[%s344_s14 + $0x8] sm:$0xff] %v368_v7  ;;  %p769_p9 = pnand %p768_p7, %p1216_p8  ;;  %s773_s9 = scalar_lea.vmem %s772_s6, 512 }
  0x9b   : > { %p774_p13 = scmp.lt.s32.totalorder %s1128_s1, %s772_s6  ;;  %p775_p11 = scmp.lt.s32.totalorder %s773_s9, %s767_s5 }
  0x9c   : > { %p770_p6 = pneg %p769_p9 }
  0x9d   : > { %p776_p2 = por %p775_p11, %p774_p13 }
  0x9f   : > { %p777_p5 = pnand %p776_p2, %p770_p6 }
  0xa1   : > { %780 = shalt.err (!%p777_p5)
}
  0xa2   : > { %s781_s10 = scalar_lea.hbm %s1133_s20, 256  ;;  %s785_s29 = scalar_lea.hbm %s1186_s4, 512 }
  0xa3   : > { %p782_p0 = scmp.ne.s32.totalorder %s1133_s20, %s781_s10  ;;  %p786_p12 = scmp.lt.u32.totalorder %s1133_s20, %s1186_s4 }
  0xa4   : > { %p787_p10 = scmp.lt.u32.totalorder %s785_s29, %s781_s10  ;;  %p789_p7 = scmp.lt.u32.totalorder %s781_s10, %s1133_s20 }
  0xa5   : > { %p783_p3 = pnand %p782_p0, %p1216_p8 }
  0xa6   : > { %p788_p4 = por %p787_p10, %p786_p12 }
  0xa7   : > { %p784_p1 = pneg %p783_p3 }
  0xa8   : > { %p790_p9 = por %p789_p7, %p788_p4 }
  0xaa   : > { %p791_p6 = pnand %p790_p9, %p784_p1 }
  0xac   : > { %794 = shalt.err (!%p791_p6)
}
  0xad   : > { %s864_s24 = smov 128   ;;  %s865_s13 = smov 8  }
  0xae   : > { %576 = dma.vmem_to_hbm [thread:$0]  (%p1216_p8), %s1128_s1, 256, %s1133_s20, %s380_s7, %s864_s24, %s864_s24, %s865_s13  }
  0xaf PF: > { %s1217_s26 = sld [smem:[#allocation18_spill]]  ;;  %s408_s12 = sand.u32 1, %s837_s15  }
  0xb0   : > { %p1218_p13 = scmp.ne.s32.totalorder %s1205_s30, 0  ;;  %s409_s21 = scalar_lea.sflag [#allocation5], %s408_s12 }
  0xb5   : > { %p1219_p11 = scmp.ge.s32.totalorder %s1217_s26, 2 }
  0xb7   : > { %p592_p2 = pnand %p1219_p11, %p1218_p13 }
  0xb9   : > { %832 = dma.done.wait (!%p592_p2), %s409_s21, 256  }
  0xba   : > { %834 = vsyncadd (!%p592_p2), %s409_s21, 4294967040  ;;  %s26_s20 = sadd.s32 1, %s1217_s26   ;;  %s1220_s14 = sld [smem:[#allocation16_spill]] }
  0xbb   : > { %p23_p5 = scmp.ge.s32.totalorder %s26_s20, 4   ;;  %s1221_s17 = sld [smem:[#allocation20_spill]] }
  0xbc   : > { %s1222_s18 = sld [smem:[#allocation17_spill]]  ;;  %s1223_s19 = sld [smem:[#allocation19_spill]] }
  0xbd   : > { %s1224_s15 = smov %s841_s16  ;;  %25 = sbr.rel (!%p23_p5) target bundleno = 12 (0xc), region = 127 }
  0xc0   : > { %s1225_s16 = smov %s1220_s14 }
  0xc4   :  { %414 = vsyncpa [#allocation4], 1 }
  0xc5   :  { %416 = vsyncpa [#allocation4 + $0x1], 1 }
  0xc6   :  { %417 = vsyncpa [#allocation7], 1 }
  0xc7   :  { %419 = vsyncpa [#allocation7 + $0x1], 1 }
  0xc8   :  { %420 = vsyncpa [#allocation10], 1 }
  0xc9   :  { %422 = vsyncpa [#allocation10 + $0x1], 1 }
  0xca   :  { %423 = vsyncpa [#allocation5], 1 }
  0xcb   :  { %425 = vsyncpa [#allocation5 + $0x1], 1 }

</bundles_post_ra>
